<compile_context>
chip_gen: v5e
topology: v5e:2x2
jax: 0.10.0
libtpu: 0.0.40
codegen_flags: <defaults>
</compile_context>

<pallas_src>
import functools
import math

import jax
import jax.numpy as jnp
import numpy as np
from jax.experimental import pallas as pl
from jax.experimental.pallas import tpu as pltpu

BATCH = 2
SEQ = 8
DIM = 32
MAX_LEN = 5000


# ------------------------- sinusoid table (host side) -------------------------
def make_positional_encoding(max_len, dim):
    position = jnp.arange(max_len, dtype=jnp.float32)[:, None]
    div_term = jnp.exp(jnp.arange(0, dim, 2, dtype=jnp.float32)
                       * -(math.log(10000.0) / dim))
    ang = position * div_term
    pe = jnp.zeros((max_len, dim), jnp.float32)
    pe = pe.at[:, 0::2].set(jnp.sin(ang))
    pe = pe.at[:, 1::2].set(jnp.cos(ang))
    return pe


# --------------------------------- kernel -------------------------------------
def _pe_kernel(emb_ref, pe_ref, out_ref, *, scale):
    # emb_ref: (1, S, D) block for this batch row; pe_ref: (S, D) shared slab.
    out_ref[...] = emb_ref[...] * scale + pe_ref[...][None, :, :]


def positional_encoding(emb, pe_table, step=None):
    """emb: (B, S, D) float32.  Returns emb * sqrt(D) + positional encoding."""
    B, S, D = emb.shape
    scale = math.sqrt(D)

    if step is not None:
        # pe[:, step] broadcast over the sequence dimension (decode-step path).
        pe_slab = jnp.broadcast_to(pe_table[step][None, :], (S, D))
    else:
        pe_slab = pe_table[:S]

    kernel = functools.partial(_pe_kernel, scale=scale)
    return pl.pallas_call(
        kernel,
        out_shape=jax.ShapeDtypeStruct((B, S, D), emb.dtype),
        grid=(B,),
        in_specs=[
            pl.BlockSpec((1, S, D), lambda b: (b, 0, 0)),
            pl.BlockSpec((S, D), lambda b: (0, 0)),
        ],
        out_specs=pl.BlockSpec((1, S, D), lambda b: (b, 0, 0)),
        compiler_params=pltpu.CompilerParams(
            dimension_semantics=("parallel",)),
    )(emb, pe_slab)


# ----------------------------------- main --------------------------------------
if __name__ == "__main__":
    key = jax.random.PRNGKey(0)
    emb = jax.random.normal(key, (BATCH, SEQ, DIM), jnp.float32)
    pe_table = make_positional_encoding(MAX_LEN, DIM)

    # TODO(synk): nn.Dropout is treated as identity (eval mode / p effectively 0).

    # ---- default path: emb * sqrt(dim) + pe[:, :seq_len] ----------------------
    out = positional_encoding(emb, pe_table)
    out = jax.block_until_ready(out)
    ref = emb * math.sqrt(DIM) + pe_table[:SEQ][None, :, :]
    np.testing.assert_allclose(np.asarray(out), np.asarray(ref),
                               atol=1e-6, rtol=1e-6)
    assert out.shape == (BATCH, SEQ, DIM)

    # ---- step path: emb * sqrt(dim) + pe[:, step] broadcast --------------------
    step = 3
    out_step = jax.block_until_ready(positional_encoding(emb, pe_table, step=step))
    ref_step = emb * math.sqrt(DIM) + pe_table[step][None, None, :]
    np.testing.assert_allclose(np.asarray(out_step), np.asarray(ref_step),
                               atol=1e-6, rtol=1e-6)

    print("KERNEL_OK")
</pallas_src>

<mosaic_0001>
module attributes {stable_mosaic.version = 11 : i64} {
  func.func @_pe_kernel(%arg0: i32, %arg1: memref<1x8x32xf32, #tpu.memory_space<vmem>>, %arg2: memref<8x32xf32, #tpu.memory_space<vmem>>, %arg3: memref<1x8x32xf32, #tpu.memory_space<vmem>>) attributes {dimension_semantics = [#tpu.dimension_semantics<parallel>], iteration_bounds = array<i64: 2>, scalar_prefetch = 0 : i64, scratch_operands = 0 : i64, tpu.core_type = #tpu.core_type<tc>, window_params = [{transform_indices = @transform_0, window_bounds = array<i64: 1, 8, 32>}, {pipeline_mode = #tpu.pipeline_mode<synchronous>, transform_indices = @transform_1, window_bounds = array<i64: 8, 32>}, {transform_indices = @transform_2, window_bounds = array<i64: 1, 8, 32>}]} {
    %c0 = arith.constant 0 : index
    %c0_0 = arith.constant 0 : index
    %c0_1 = arith.constant 0 : index
    %0 = vector.load %arg1[%c0, %c0_0, %c0_1] : memref<1x8x32xf32, #tpu.memory_space<vmem>>, vector<1x8x32xf32>
    %cst = arith.constant 5.65685415 : f32
    %1 = vector.broadcast %cst : f32 to vector<1x8x32xf32>
    %2 = arith.mulf %0, %1 : vector<1x8x32xf32>
    %c0_2 = arith.constant 0 : index
    %c0_3 = arith.constant 0 : index
    %3 = vector.load %arg2[%c0_2, %c0_3] : memref<8x32xf32, #tpu.memory_space<vmem>>, vector<8x32xf32>
    %4 = vector.shape_cast %3 : vector<8x32xf32> to vector<1x8x32xf32>
    %5 = arith.addf %2, %4 : vector<1x8x32xf32>
    %c0_4 = arith.constant 0 : index
    %c0_5 = arith.constant 0 : index
    %c0_6 = arith.constant 0 : index
    %6 = vector.load %arg3[%c0_4, %c0_5, %c0_6] : memref<1x8x32xf32, #tpu.memory_space<vmem>>, vector<1x8x32xf32>
    tpu.vector_store %arg3[%c0_4, %c0_5, %c0_6], %5 {strides = array<i32>} : memref<1x8x32xf32, #tpu.memory_space<vmem>>, vector<1x8x32xf32>,
    return
  }
  func.func @transform_0(%arg0: i32) -> (i32, i32, i32) {
    %c0_i32 = arith.constant 0 : i32
    %c0_i32_0 = arith.constant 0 : i32
    %c0_i32_1 = arith.constant 0 : i32
    return %arg0, %c0_i32, %c0_i32_0 : i32, i32, i32
  }
  func.func @transform_1(%arg0: i32) -> (i32, i32) {
    %c0_i32 = arith.constant 0 : i32
    %c0_i32_0 = arith.constant 0 : i32
    %c0_i32_1 = arith.constant 0 : i32
    return %c0_i32, %c0_i32_0 : i32, i32
  }
  func.func @transform_2(%arg0: i32) -> (i32, i32, i32) {
    %c0_i32 = arith.constant 0 : i32
    %c0_i32_0 = arith.constant 0 : i32
    %c0_i32_1 = arith.constant 0 : i32
    return %arg0, %c0_i32, %c0_i32_0 : i32, i32, i32
  }
}

</mosaic_0001>

<bundles_post_ra>
// kernel: tpu_custom_call.1
= control target key start
LH: loop header
LB: loop body
LE: loop exit
PB: predicated region body
PF: predicated region fallthrough
CT: control target
= control target key end

     0   :  { %7 = vsyncpa [#allocation3], 0  ;;  %s635_s0 = inlined_call_operand.hbm [shape: f32[2,8,32], index: 0, kind: input, shape index: {}]   ;;  %s636_s1 = inlined_call_operand.hbm [shape: f32[8,32], index: 1, kind: input, shape index: {}]   ;;  %s637_s2 = inlined_call_operand.hbm [shape: f32[2,8,32], index: 2, kind: output, shape index: {}]  }
   0x1   :  { %9 = vsyncpa [#allocation3 + $0x1], 0 }
   0x2   :  { %10 = vsyncpa [#allocation6], 0 }
   0x3   :  { %11 = vsyncpa [#allocation4], 0 }
   0x4   :  { %13 = vsyncpa [#allocation4 + $0x1], 0  ;;  %s497_s9 = smov 0   ;;  %s499_s10 = smov 0  }
   0x5   :  { %s501_s11 = smov 0   ;;  %s503_s12 = smov 0  }
   0x6 LB: > { %s518_s13 = sadd.s32 4294967295, %s479_s12   ;;  %s278_s14 = sadd.s32 4294967294, %s479_s12   ;;  %s479_s12 = sphi %s503_s12, %s647_s12   ;;  %s475_s11 = sphi %s501_s11, %s646_s11   ;;  %s471_s10 = sphi %s499_s10, %s645_s10   ;;  %s467_s9 = sphi %s497_s9, %s644_s9  }
   0x7   : > { %p39_p0 = scmp.ne.s32.totalorder %s471_s10, %s467_s9  ;;  %p40_p1 = scmp.eq.s32.totalorder %s518_s13, 0 }
   0x8   : > { %p84_p2 = scmp.eq.s32.totalorder %s518_s13, 1  ;;  %p90_p3 = scmp.eq.s32.totalorder %s278_s14, 1 }
   0x9   : > { %p527_p4 = por %p40_p1, %p39_p0  ;;  %p279_p5 = scmp.ge.s32.totalorder %s479_s12, 1 }
   0xa   : > { %p532_p6 = por %p90_p3, %p39_p0  ;;  %p97_p7 = scmp.lt.s32.totalorder %s479_s12, 3 }
   0xb   : > { %s109_s19 = sshll.u32 %s636_s1, 4  ;;  %s481_s21 = smov [#allocation5]   ;;  %s110_s19 = int_to_ptr.hbm [resolvable:$true] %s109_s19 }
   0xc   : > { %p540_p8 = pnand %p279_p5, %p97_p7  ;;  %s111_s22 = sshll.u32 %s481_s21, 4  ;;  %s112_s22 = int_to_ptr.vmem [resolvable:$true] %s111_s22 }
   0xd   : > { %s550_s23 = sadd.s32 1, %s479_s12   ;;  %s26_s24 = sadd.s32 1, %s475_s11 }
   0xe   : > { %p300_p10 = pneg %p540_p8  ;;  %s23_s25 = ssub.s32 %s479_s12, %s550_s23 }
   0xf   : > { %p24_p12 = scmp.eq.s32.totalorder %s23_s25, 0  ;;  %p33_p13 = scmp.ne.s32.totalorder %s475_s11, %s471_s10 }
  0x10   : > { %p301_p11 = pnand %p300_p10, %p40_p1  ;;  %p34_p0 = scmp.eq.s32.totalorder %s479_s12, 0 }
  0x11   : > { %s559_s26 = scalar_select %p24_p12, %s475_s11, %s26_s24  }
  0x12   : > { %303 = dma.hbm_to_vmem [thread:$0]  (!%p301_p11), %s110_s19, 128, %s112_s22, [#allocation6]  }
  0x13   : > { %p563_p3 = por %p84_p2, %p33_p13  ;;  %p313_p5 = scmp.lt.s32.totalorder %s479_s12, 2 }
  0x14   : > { %s122_s28 = sand.u32 1, %s475_s11   ;;  %s283_s29 = sshll.u32 %s479_s12, 3 }
  0x15   : > { %p35_p7 = por %p34_p0, %p33_p13  ;;  %s282_s30 = sshll.u32 %s122_s28, 3 }
  0x16   : > { %s130_s5 = scalar_lea.hbm %s635_s0, %s283_s29  ;;  %s126_s7 = scalar_lea.vmem [#allocation2], %s282_s30 }
  0x17   : > { %s132_s6 = sshll.u32 %s130_s5, 4  ;;  %s134_s8 = sshll.u32 %s126_s7, 4  ;;  %s133_s6 = int_to_ptr.hbm [resolvable:$true] %s132_s6  ;;  %s135_s8 = int_to_ptr.vmem [resolvable:$true] %s134_s8 }
  0x18   : > { %p573_p10 = pnand %p313_p5, %p35_p7  ;;  %s123_s17 = scalar_lea.sflag [#allocation3], %s122_s28 }
  0x19   : > { %s379_s18 = sshra.s32 %s133_s6, 4  ;;  %s386_s24 = scalar_lea.hbm %s635_s0, 16  ;;  %s380_s18 = int_to_ptr.hbm [resolvable:$true] %s379_s18 }
  0x1a   : > { %s381_s19 = scalar_lea.hbm %s380_s18, 8  ;;  %p383_p11 = pneg %p573_p10 }
  0x1b   : > { %p382_p2 = scmp.ne.s32.totalorder %s380_s18, %s381_s19  ;;  %p387_p0 = scmp.lt.s32.totalorder %s380_s18, %s635_s0 }
  0x1c   : > { %p388_p5 = scmp.lt.s32.totalorder %s386_s24, %s381_s19 }
  0x1d   : > { %p384_p12 = pnand %p383_p11, %p382_p2 }
  0x1e   : > { %p389_p7 = por %p388_p5, %p387_p0 }
  0x1f   : > { %p385_p13 = pneg %p384_p12 }
  0x21   : > { %p390_p9 = pnand %p389_p7, %p385_p13 }
  0x23   : > { %393 = shalt.err (!%p390_p9)
}
  0x24   : > { %307 = dma.hbm_to_vmem [thread:$0]  (!%p573_p10), %s133_s6, 128, %s135_s8, %s123_s17  }
  0x25   : > { %143 = sbr.rel (%p540_p8) target bundleno = 60 (0x3c), region = 28  ;;  %s590_s28 = sand.u32 (!%p540_p8), 1, %s471_s10  }
  0x26   : > { %s285_s30 = sshll.u32 (!%p540_p8), %s590_s28, 3  ;;  %s146_s3 = scalar_lea.sflag (!%p540_p8), [#allocation3], %s590_s28 }
  0x27   : > { %s149_s4 = scalar_lea.vmem (!%p540_p8), [#allocation2], %s285_s30 }
  0x2a   : > { %454 = dma.done.wait (%p527_p4), %s146_s3, 128  }
  0x2b   : > { %456 = vsyncadd (%p527_p4), %s146_s3, 4294967168 }
  0x2c   : > { %458 = dma.done.wait (%p40_p1), [#allocation6], 128  }
  0x2d   : > { %460 = vsyncadd (%p40_p1), [#allocation6], 4294967168  ;;  %s289_s20 = sshll.u32 %s518_s13, 3  ;;  %v176_v0 = vld [vmem:[%s149_s4] sm:$0xff]  ;;  %v178_v1 = vld [vmem:[#allocation5] sm:$0xff]  ;;  %s175_s8 = scalar_lea.vmem [#allocation7], %s285_s30 }
  0x2e   : > { %s193_s7 = scalar_lea.hbm %s637_s2, %s289_s20  ;;  %s195_s14 = sshll.u32 %s175_s8, 4  ;;  %v177_v2 = vmul.f32 5.656854, %v176_v0  ;;  %vm180_vm0 = vcmask 261120   ;;  %s196_s14 = int_to_ptr.vmem [resolvable:$true] %s195_s14 }
  0x2f   : > { %s197_s15 = sshll.u32 %s193_s7, 4  ;;  %s183_s17 = scalar_lea.sflag [#allocation4], %s590_s28  ;;  %s198_s15 = int_to_ptr.hbm [resolvable:$true] %s197_s15 }
  0x30   : > { %v179_v3 = vadd.f32 %v178_v1, %v177_v2  ;;  %s423_s18 = sshra.s32 %s198_s15, 4  ;;  %s429_s22 = scalar_lea.hbm %s637_s2, 16  ;;  %s424_s18 = int_to_ptr.hbm [resolvable:$true] %s423_s18 }
  0x31   : > { %s425_s13 = scalar_lea.hbm %s424_s18, 8  ;;  %p430_p9 = scmp.lt.s32.totalorder %s424_s18, %s637_s2 }
  0x32   : > { %181 = vst.msk [vmem:[%s175_s8] sm:$0xff] %vm180_vm0, %v179_v3  ;;  %p426_p1 = scmp.ne.s32.totalorder %s424_s18, %s425_s13  ;;  %p431_p10 = scmp.lt.s32.totalorder %s429_s22, %s425_s13 }
  0x34   : > { %p427_p4 = pnand %p426_p1, %p563_p3  ;;  %p432_p2 = por %p431_p10, %p430_p9 }
  0x36   : > { %p428_p8 = pneg %p427_p4 }
  0x38   : > { %p433_p11 = pnand %p432_p2, %p428_p8 }
  0x3a   : > { %436 = shalt.err (!%p433_p11)
}
  0x3b   : > { %298 = dma.vmem_to_hbm [thread:$0]  (%p563_p3), %s196_s14, 128, %s198_s15, %s183_s17  }
  0x3c PF: > { %s209_s29 = sand.u32 1, %s467_s9   ;;  %p643_p12 = scmp.ge.s32.totalorder %s479_s12, 2 }
  0x3d   : > { %s210_s28 = scalar_lea.sflag [#allocation4], %s209_s29 }
  0x3e   : > { %p309_p13 = pnand %p643_p12, %p532_p6 }
  0x40   : > { %p310_p0 = pneg %p309_p13 }
  0x42   : > { %462 = dma.done.wait (%p310_p0), %s210_s28, 128  }
  0x43   : > { %464 = vsyncadd (%p310_p0), %s210_s28, 4294967168  ;;  %p16_p5 = scmp.ge.s32.totalorder %s550_s23, 4   ;;  %s644_s9 = smov %s471_s10 }
  0x44   : > { %s645_s10 = smov %s475_s11  ;;  %s646_s11 = smov %s559_s26 }
  0x45   : > { %s647_s12 = smov %s550_s23  ;;  %18 = sbr.rel (!%p16_p5) target bundleno = 6 (0x6), region = 77 }
  0x4a   :  { %216 = vsyncpa [#allocation3], 1 }
  0x4b   :  { %218 = vsyncpa [#allocation3 + $0x1], 1 }
  0x4c   :  { %219 = vsyncpa [#allocation6], 1 }
  0x4d   :  { %220 = vsyncpa [#allocation4], 1 }
  0x4e   :  { %222 = vsyncpa [#allocation4 + $0x1], 1 }

</bundles_post_ra>
